<compile_context>
chip_gen: v5e
topology: v5e:2x2
jax: 0.10.0
libtpu: 0.0.40
codegen_flags: <defaults>
</compile_context>

<pallas_src>
import numpy as np
import jax
import jax.numpy as jnp
from jax.experimental import pallas as pl
from jax.experimental.pallas import tpu as pltpu


# FCTestModel's hard-coded parameters -> compile-time constants baked into the
# kernel as scalar splats (no weight/bias operand, no second DMA).
_WEIGHT = ((0.1, 0.2, 0.3, 0.2),
           (0.3, -0.1, 0.2, 0.4))      # [OUT=2, K=4]
_BIAS = (1.0, 1.1)                     # [OUT=2]
_K = len(_WEIGHT[0])
_OUT = len(_WEIGHT)


def _fc_kernel(xt_ref, ot_ref):
    """Lane-dense transposed FC:  y^T = W @ x^T + b.

    xt_ref: [K, tm]    -- M on the lane axis: full-width vector loads
    ot_ref: [OUT, tm]  -- lane-dense output: unmasked stores

    Weights/bias are Python constants -> pure scalar-broadcast VPU FMAs.
    No MXU (K=4, OUT=2 is <1% systolic-array utilization) and no cross-lane /
    cross-sublane data movement anywhere in the body.
    """
    xt = xt_ref[...]                                   # [K, tm]
    rows = []
    for o in range(_OUT):                              # statically unrolled
        acc = xt[0:1, :] * _WEIGHT[o][0]
        for k in range(1, _K):
            acc = acc + xt[k:k + 1, :] * _WEIGHT[o][k]
        rows.append(acc + _BIAS[o])                    # fused bias add
    ot_ref[...] = jnp.concatenate(rows, axis=0)        # one [OUT, tm] store


def fc_forward(x, *, lane_tile=2048):
    """FCTestModel.forward: nn.Linear(4, 2) applied to the last dim of x.

    x : [..., 4] float32
    returns: [..., 2] float32
    """
    *lead, k = x.shape
    assert k == _K, f"expected last dim {_K}, got {k}"
    M = int(np.prod(lead)) if lead else 1

    # Wrapper-side layout plumbing: put M on the lane axis (x^T is [K, M]).
    xt = x.reshape(M, _K).T

    if M <= lane_tile:
        tm = M                      # single full-extent block (module's case)
    else:
        tm = lane_tile              # multiple of 128 -> (8,128)-legal tiles;
                                    # grid >= 2 steps -> both v7x TCs engaged
    grid = (pl.cdiv(M, tm),)

    # Honest tiny cost hint for XLA's scheduler.
    flops = 2 * M * _K * _OUT + M * _OUT
    bytes_accessed = 4 * (M * _K + M * _OUT)

    yt = pl.pallas_call(
        _fc_kernel,
        out_shape=jax.ShapeDtypeStruct((_OUT, M), jnp.float32),
        grid=grid,
        in_specs=[pl.BlockSpec((_K, tm), lambda i: (0, i))],
        out_specs=pl.BlockSpec((_OUT, tm), lambda i: (0, i)),
        compiler_params=pltpu.CompilerParams(
            dimension_semantics=("parallel",)),
        cost_estimate=pl.CostEstimate(
            flops=flops, transcendentals=0, bytes_accessed=bytes_accessed),
    )(xt)

    # y^T [OUT, M] -> y [..., OUT]
    return yt.T.reshape(*lead, _OUT)


if __name__ == "__main__":
    # Module-implied input: INPUT_SIZE = [1, 1, 4, 4].
    x = jax.random.normal(jax.random.PRNGKey(0), (1, 1, 4, 4), dtype=jnp.float32)

    y = jax.block_until_ready(fc_forward(x))

    # NumPy reference: Linear over the last dim with the module's parameters.
    w = np.asarray(_WEIGHT, dtype=np.float32)
    b = np.asarray(_BIAS, dtype=np.float32)
    x_np = np.asarray(x)
    y_ref = (x_np.reshape(-1, _K) @ w.T + b).reshape(1, 1, 4, 2)

    assert y.shape == (1, 1, 4, 2), y.shape
    assert np.allclose(np.asarray(y), y_ref, atol=1e-5, rtol=1e-5)

    print("KERNEL_OK")
</pallas_src>

<mosaic_0001>
module attributes {stable_mosaic.version = 11 : i64} {
  func.func @_fc_kernel(%arg0: i32, %arg1: memref<4x4xf32, #tpu.memory_space<vmem>>, %arg2: memref<2x4xf32, #tpu.memory_space<vmem>>) attributes {dimension_semantics = [#tpu.dimension_semantics<parallel>], iteration_bounds = array<i64: 1>, scalar_prefetch = 0 : i64, scratch_operands = 0 : i64, tpu.core_type = #tpu.core_type<tc>, window_params = [{transform_indices = @transform_0, window_bounds = array<i64: 4, 4>}, {transform_indices = @transform_1, window_bounds = array<i64: 2, 4>}]} {
    %c0 = arith.constant 0 : index
    %c0_0 = arith.constant 0 : index
    %0 = vector.load %arg1[%c0, %c0_0] : memref<4x4xf32, #tpu.memory_space<vmem>>, vector<4x4xf32>
    %1 = vector.extract_strided_slice %0 {offsets = [0, 0], sizes = [1, 4], strides = [1, 1]} : vector<4x4xf32> to vector<1x4xf32>
    %cst = arith.constant 1.000000e-01 : f32
    %2 = vector.broadcast %cst : f32 to vector<1x4xf32>
    %3 = arith.mulf %1, %2 : vector<1x4xf32>
    %4 = vector.extract_strided_slice %0 {offsets = [1, 0], sizes = [1, 4], strides = [1, 1]} : vector<4x4xf32> to vector<1x4xf32>
    %cst_1 = arith.constant 2.000000e-01 : f32
    %5 = vector.broadcast %cst_1 : f32 to vector<1x4xf32>
    %6 = arith.mulf %4, %5 : vector<1x4xf32>
    %7 = arith.addf %3, %6 : vector<1x4xf32>
    %8 = vector.extract_strided_slice %0 {offsets = [2, 0], sizes = [1, 4], strides = [1, 1]} : vector<4x4xf32> to vector<1x4xf32>
    %cst_2 = arith.constant 3.000000e-01 : f32
    %9 = vector.broadcast %cst_2 : f32 to vector<1x4xf32>
    %10 = arith.mulf %8, %9 : vector<1x4xf32>
    %11 = arith.addf %7, %10 : vector<1x4xf32>
    %12 = vector.extract_strided_slice %0 {offsets = [3, 0], sizes = [1, 4], strides = [1, 1]} : vector<4x4xf32> to vector<1x4xf32>
    %cst_3 = arith.constant 2.000000e-01 : f32
    %13 = vector.broadcast %cst_3 : f32 to vector<1x4xf32>
    %14 = arith.mulf %12, %13 : vector<1x4xf32>
    %15 = arith.addf %11, %14 : vector<1x4xf32>
    %cst_4 = arith.constant 1.000000e+00 : f32
    %16 = vector.broadcast %cst_4 : f32 to vector<1x4xf32>
    %17 = arith.addf %15, %16 : vector<1x4xf32>
    %18 = vector.extract_strided_slice %0 {offsets = [0, 0], sizes = [1, 4], strides = [1, 1]} : vector<4x4xf32> to vector<1x4xf32>
    %cst_5 = arith.constant 3.000000e-01 : f32
    %19 = vector.broadcast %cst_5 : f32 to vector<1x4xf32>
    %20 = arith.mulf %18, %19 : vector<1x4xf32>
    %21 = vector.extract_strided_slice %0 {offsets = [1, 0], sizes = [1, 4], strides = [1, 1]} : vector<4x4xf32> to vector<1x4xf32>
    %cst_6 = arith.constant -1.000000e-01 : f32
    %22 = vector.broadcast %cst_6 : f32 to vector<1x4xf32>
    %23 = arith.mulf %21, %22 : vector<1x4xf32>
    %24 = arith.addf %20, %23 : vector<1x4xf32>
    %25 = vector.extract_strided_slice %0 {offsets = [2, 0], sizes = [1, 4], strides = [1, 1]} : vector<4x4xf32> to vector<1x4xf32>
    %cst_7 = arith.constant 2.000000e-01 : f32
    %26 = vector.broadcast %cst_7 : f32 to vector<1x4xf32>
    %27 = arith.mulf %25, %26 : vector<1x4xf32>
    %28 = arith.addf %24, %27 : vector<1x4xf32>
    %29 = vector.extract_strided_slice %0 {offsets = [3, 0], sizes = [1, 4], strides = [1, 1]} : vector<4x4xf32> to vector<1x4xf32>
    %cst_8 = arith.constant 4.000000e-01 : f32
    %30 = vector.broadcast %cst_8 : f32 to vector<1x4xf32>
    %31 = arith.mulf %29, %30 : vector<1x4xf32>
    %32 = arith.addf %28, %31 : vector<1x4xf32>
    %cst_9 = arith.constant 1.100000e+00 : f32
    %33 = vector.broadcast %cst_9 : f32 to vector<1x4xf32>
    %34 = arith.addf %32, %33 : vector<1x4xf32>
    %35 = tpu.concatenate %17, %34 in 0 : vector<1x4xf32>, vector<1x4xf32> -> vector<2x4xf32>
    %c0_10 = arith.constant 0 : index
    %c0_11 = arith.constant 0 : index
    %36 = vector.load %arg2[%c0_10, %c0_11] : memref<2x4xf32, #tpu.memory_space<vmem>>, vector<2x4xf32>
    tpu.vector_store %arg2[%c0_10, %c0_11], %35 {strides = array<i32>} : memref<2x4xf32, #tpu.memory_space<vmem>>, vector<2x4xf32>,
    return
  }
  func.func @transform_0(%arg0: i32) -> (i32, i32) {
    %c0_i32 = arith.constant 0 : i32
    %c0_i32_0 = arith.constant 0 : i32
    return %c0_i32, %arg0 : i32, i32
  }
  func.func @transform_1(%arg0: i32) -> (i32, i32) {
    %c0_i32 = arith.constant 0 : i32
    %c0_i32_0 = arith.constant 0 : i32
    return %c0_i32, %arg0 : i32, i32
  }
}

</mosaic_0001>

<bundles_post_ra>
// kernel: tpu_custom_call.1
= control target key start
LH: loop header
LB: loop body
LE: loop exit
PB: predicated region body
PF: predicated region fallthrough
CT: control target
= control target key end

     0   :  { %6 = vsyncpa [#allocation3], 0  ;;  %s149_s0 = inlined_call_operand.hbm [shape: f32[4,4], index: 0, kind: input, shape index: {}]   ;;  %s150_s1 = inlined_call_operand.hbm [shape: f32[2,4], index: 1, kind: output, shape index: {}]  }
   0x1   :  { %7 = vsyncpa [#allocation4], 0  ;;  %s13_s8 = sshll.u32 %s149_s0, 4  ;;  %s131_s9 = smov [#allocation2]   ;;  %s14_s8 = int_to_ptr.hbm [resolvable:$true] %s13_s8 }
   0x2   :  { %s15_s10 = sshll.u32 %s131_s9, 4  ;;  %s16_s10 = int_to_ptr.vmem [resolvable:$true] %s15_s10 }
   0x3   :  { %18 = dma.hbm_to_vmem [thread:$0]  %s14_s8, 64, %s16_s10, [#allocation3]  }
   0x4   :  { %127 = dma.done.wait [#allocation3], 64  }
   0x5   :  { %128 = vsyncadd [#allocation3], 4294967232  ;;  %v23_v0 = vld [vmem:[#allocation2] sm:$0xf]  ;;  %s132_s0 = smov [#allocation5]   ;;  %s67_s14 = sshll.u32 %s150_s1, 4  ;;  %s68_s14 = int_to_ptr.hbm [resolvable:$true] %s67_s14 }
   0x6   :  { %v24_v1 = vmul.f32 0.1, %v23_v0  ;;  %v25_v2 = vmul.f32 0.2, %v23_v0  ;;  %v30_v3 = vmul.f32 0.3, %v23_v0 }
   0x7   :  { %v39_v4 = vmul.f32 -0.1, %v23_v0  ;;  %v47_v5 = vmul.f32 0.4, %v23_v0  ;;  %s65_s11 = sshll.u32 %s132_s0, 4  ;;  %vm56_vm0 = vcmask 1040384   ;;  %s66_s11 = int_to_ptr.vmem [resolvable:$true] %s65_s11 }
   0x8   :  { %v27_v6 = vrot.slane %v25_v2, 1  ;;  %v32_v7 = vrot.slane %v30_v3, 2  ;;  %v44_v9 = vrot.slane %v25_v2, 2  ;;  %v35_v11 = vrot.slane %v25_v2, 3 }
   0x9   :  { %v41_v8 = vrot.slane %v39_v4, 1  ;;  %v49_v13 = vrot.slane %v47_v5, 3  ;;  %vm58_vm1 = vcmask 25600  }
   0xa   :  { %v29_v10 = vadd.f32 %v27_v6, %v24_v1 }
   0xb   :  { %v43_v12 = vadd.f32 %v41_v8, %v30_v3 }
   0xc   :  { %v34_v14 = vadd.f32 %v32_v7, %v29_v10 }
   0xd   :  { %v46_v15 = vadd.f32 %v44_v9, %v43_v12 }
   0xe   :  { %v37_v16 = vadd.f32 %v35_v11, %v34_v14 }
   0xf   :  { %v51_v17 = vadd.f32 %v49_v13, %v46_v15 }
  0x10   :  { %v38_v18 = vadd.f32 1.0, %v37_v16 }
  0x11   :  { %v52_v19 = vadd.f32 1.1, %v51_v17 }
  0x13   :  { %v54_v20 = vrot.slane %v52_v19, 7 }
  0x15   :  { %v57_v21 = vsel %vm56_vm0, %v38_v18, %v54_v20 }
  0x16   :  { %59 = vst.msk [vmem:[#allocation5] sm:$0x3] %vm58_vm1, %v57_v21 }
  0x17   :  { %70 = dma.vmem_to_hbm [thread:$0]  %s66_s11, 32, %s68_s14, [#allocation4]  }
  0x18   :  { %129 = dma.done.wait [#allocation4], 32  }
  0x19   :  { %130 = vsyncadd [#allocation4], 4294967264 }
  0x1a   :  { %75 = vsyncpa [#allocation3], 1 }
  0x1b   :  { %76 = vsyncpa [#allocation4], 1 }

</bundles_post_ra>
